<compile_context>
chip_gen: v7x
topology: tpu7x:2x2x1
jax: 0.10.0
libtpu: 0.0.40
codegen_flags: <defaults>
</compile_context>

<pallas_src>
import jax
import jax.numpy as jnp
from jax.experimental import pallas as pl
from jax.experimental.pallas import tpu as pltpu

INPUT_DIM = 3
HIDDEN_DIM = 32
NEG_SLOPE = 0.01


def _leaky_relu(x):
    return jnp.where(x > 0, x, NEG_SLOPE * x)


def mlp_kernel(x_ref, w1_ref, b1_ref, w2_ref, b2_ref, w3_ref, b3_ref, o_ref):
    # x_ref: (IN, TB)  -- batch on lanes
    # w1_ref: (H, IN), b1_ref: (H, 1)
    # w2_ref: (H, H),  b2_ref: (H, 1)
    # w3_ref: (H, 1)   -- fc3 weight as a column for broadcast
    # b3_ref: (1, 1)   -- scalar in SMEM
    # o_ref : (1, TB)  -- lane-dense output tile
    x = x_ref[...].astype(jnp.float32)

    # Layer 1 (MXU): (H, IN) @ (IN, TB) -> (H, TB)
    h1 = jnp.dot(w1_ref[...], x, preferred_element_type=jnp.float32) + b1_ref[...]
    h1 = _leaky_relu(h1)

    # Layer 2 (MXU): (H, H) @ (H, TB) -> (H, TB)
    h2 = jnp.dot(w2_ref[...], h1, preferred_element_type=jnp.float32) + b2_ref[...]
    h2 = _leaky_relu(h2)

    # Layer 3: N would be 1 on the MXU (>=99% wasted columns) -> do it on the
    # VPU (broadcast multiply) + XLU (sublane reduce) instead.
    h3 = jnp.sum(h2 * w3_ref[...], axis=0, keepdims=True) + b3_ref[0, 0]
    o_ref[...] = _leaky_relu(h3).astype(o_ref.dtype)


def mlp_forward(x, params, *, tile_b=1024):
    """x: (B, INPUT_DIM) f32; params in torch nn.Linear layout."""
    w1, b1, w2, b2, w3, b3 = params
    B, in_dim = x.shape
    hidden = w1.shape[0]

    # Batch tile: multiple of 128 (lane width), capped at tile_b.
    TB = min(tile_b, pl.cdiv(B, 128) * 128)
    Bp = pl.cdiv(B, TB) * TB
    n_tiles = Bp // TB

    # Layout plumbing in the wrapper (cheap XLA reshapes/transposes):
    x_t = jnp.pad(x.T, ((0, 0), (0, Bp - B)))          # (IN, Bp), batch on lanes
    b1c = b1.reshape(hidden, 1)
    b2c = b2.reshape(hidden, 1)
    w3c = w3.reshape(hidden, 1)                        # (1, H) -> (H, 1)
    b3c = b3.reshape(1, 1)

    out_t = pl.pallas_call(
        mlp_kernel,
        out_shape=jax.ShapeDtypeStruct((1, Bp), jnp.float32),
        grid=(n_tiles,),
        in_specs=[
            pl.BlockSpec((in_dim, TB), lambda i: (0, i)),       # x tile (pipelined)
            pl.BlockSpec((hidden, in_dim), lambda i: (0, 0)),   # W1 (resident)
            pl.BlockSpec((hidden, 1), lambda i: (0, 0)),        # b1
            pl.BlockSpec((hidden, hidden), lambda i: (0, 0)),   # W2
            pl.BlockSpec((hidden, 1), lambda i: (0, 0)),        # b2
            pl.BlockSpec((hidden, 1), lambda i: (0, 0)),        # W3 column
            pl.BlockSpec(memory_space=pltpu.MemorySpace.SMEM),  # b3 scalar
        ],
        out_specs=pl.BlockSpec((1, TB), lambda i: (0, i)),      # lane-dense output
        compiler_params=pltpu.CompilerParams(
            dimension_semantics=("parallel",),                  # megacore on v7x
        ),
    )(x_t, w1, b1c, w2, b2c, w3c, b3c)

    # Back to the (B, 1) convention of the PyTorch module.
    return out_t[0, :B].reshape(B, 1)


def init_params(key, input_dim, hidden_dim):
    # torch nn.Linear-style init: U(-1/sqrt(fan_in), 1/sqrt(fan_in)),
    # weights stored as (out_features, in_features), bias as (out_features,).
    k = jax.random.split(key, 6)

    def lin(kw, kb, fan_in, fan_out):
        bound = 1.0 / jnp.sqrt(jnp.float32(fan_in))
        w = jax.random.uniform(kw, (fan_out, fan_in), jnp.float32, -bound, bound)
        b = jax.random.uniform(kb, (fan_out,), jnp.float32, -bound, bound)
        return w, b

    w1, b1 = lin(k[0], k[1], input_dim, hidden_dim)
    w2, b2 = lin(k[2], k[3], hidden_dim, hidden_dim)
    w3, b3 = lin(k[4], k[5], hidden_dim, 1)
    return (w1, b1, w2, b2, w3, b3)


def mlp_reference(x, params):
    w1, b1, w2, b2, w3, b3 = params

    def lr(v):
        return jnp.where(v > 0, v, NEG_SLOPE * v)

    h = lr(x @ w1.T + b1)
    h = lr(h @ w2.T + b2)
    return lr(h @ w3.T + b3)   # original module applies LeakyReLU after fc3 too


if __name__ == "__main__":
    key = jax.random.PRNGKey(0)
    kx, kp, kx2 = jax.random.split(key, 3)

    params = init_params(kp, INPUT_DIM, HIDDEN_DIM)

    # Small batch (single tile, padded to one 128-lane tile).
    B = 8
    x = jax.random.normal(kx, (B, INPUT_DIM), jnp.float32)
    out = mlp_forward(x, params)
    jax.block_until_ready(out)
    ref = mlp_reference(x, params)
    assert out.shape == (B, 1)
    assert jnp.allclose(out, ref, atol=1e-5, rtol=1e-5)

    # Slightly larger, non-multiple-of-tile batch to exercise the grid path.
    B2 = 300
    x2 = jax.random.normal(kx2, (B2, INPUT_DIM), jnp.float32)
    out2 = mlp_forward(x2, params, tile_b=128)   # forces a 3-step batch grid
    jax.block_until_ready(out2)
    ref2 = mlp_reference(x2, params)
    assert out2.shape == (B2, 1)
    assert jnp.allclose(out2, ref2, atol=1e-5, rtol=1e-5)

    print("KERNEL_OK")
</pallas_src>

<mosaic_0001>
module attributes {stable_mosaic.version = 11 : i64} {
  func.func @mlp_kernel(%arg0: i32, %arg1: memref<3x128xf32, #tpu.memory_space<vmem>>, %arg2: memref<32x3xf32, #tpu.memory_space<vmem>>, %arg3: memref<32x1xf32, #tpu.memory_space<vmem>>, %arg4: memref<32x32xf32, #tpu.memory_space<vmem>>, %arg5: memref<32x1xf32, #tpu.memory_space<vmem>>, %arg6: memref<32x1xf32, #tpu.memory_space<vmem>>, %arg7: memref<1x1xf32, #tpu.memory_space<smem>>, %arg8: memref<1x128xf32, #tpu.memory_space<vmem>>) attributes {dimension_semantics = [#tpu.dimension_semantics<parallel>], iteration_bounds = array<i64: 1>, scalar_prefetch = 0 : i64, scratch_operands = 0 : i64, tpu.core_type = #tpu.core_type<tc>, window_params = [{transform_indices = @transform_0, window_bounds = array<i64: 3, 128>}, {pipeline_mode = #tpu.pipeline_mode<synchronous>, transform_indices = @transform_1, window_bounds = array<i64: 32, 3>}, {pipeline_mode = #tpu.pipeline_mode<synchronous>, transform_indices = @transform_2, window_bounds = array<i64: 32, 1>}, {pipeline_mode = #tpu.pipeline_mode<synchronous>, transform_indices = @transform_3, window_bounds = array<i64: 32, 32>}, {pipeline_mode = #tpu.pipeline_mode<synchronous>, transform_indices = @transform_4, window_bounds = array<i64: 32, 1>}, {pipeline_mode = #tpu.pipeline_mode<synchronous>, transform_indices = @transform_5, window_bounds = array<i64: 32, 1>}, {transform_indices = @transform_6, window_bounds = array<i64: 1, 1>}, {transform_indices = @transform_7, window_bounds = array<i64: 1, 128>}]} {
    %c0 = arith.constant 0 : index
    %c0_0 = arith.constant 0 : index
    %0 = vector.load %arg1[%c0, %c0_0] : memref<3x128xf32, #tpu.memory_space<vmem>>, vector<3x128xf32>
    %c0_1 = arith.constant 0 : index
    %c0_2 = arith.constant 0 : index
    %1 = vector.load %arg2[%c0_1, %c0_2] : memref<32x3xf32, #tpu.memory_space<vmem>>, vector<32x3xf32>
    %cst = arith.constant dense<0.000000e+00> : vector<32x128xf32>
    %2 = tpu.matmul %1, %0, %cst {dimension_numbers = #tpu.dot_dimension_numbers<[1], [0], [0], [1], [0, 0, 1, 1], [], []>} : vector<32x3xf32>, vector<3x128xf32>, vector<32x128xf32> -> vector<32x128xf32>
    %c0_3 = arith.constant 0 : index
    %c0_4 = arith.constant 0 : index
    %3 = vector.load %arg3[%c0_3, %c0_4] : memref<32x1xf32, #tpu.memory_space<vmem>>, vector<32x1xf32>
    %4 = vector.broadcast %3 : vector<32x1xf32> to vector<32x128xf32>
    %5 = arith.addf %2, %4 : vector<32x128xf32>
    %cst_5 = arith.constant 0.000000e+00 : f32
    %6 = vector.broadcast %cst_5 : f32 to vector<32x128xf32>
    %7 = arith.cmpf ogt, %5, %6 : vector<32x128xf32>
    %cst_6 = arith.constant 0.00999999977 : f32
    %8 = vector.broadcast %cst_6 : f32 to vector<32x128xf32>
    %9 = arith.mulf %8, %5 : vector<32x128xf32>
    %10 = arith.select %7, %5, %9 : vector<32x128xi1>, vector<32x128xf32>
    %c0_7 = arith.constant 0 : index
    %c0_8 = arith.constant 0 : index
    %11 = vector.load %arg4[%c0_7, %c0_8] : memref<32x32xf32, #tpu.memory_space<vmem>>, vector<32x32xf32>
    %cst_9 = arith.constant dense<0.000000e+00> : vector<32x128xf32>
    %12 = tpu.matmul %11, %10, %cst_9 {dimension_numbers = #tpu.dot_dimension_numbers<[1], [0], [0], [1], [0, 0, 1, 1], [], []>} : vector<32x32xf32>, vector<32x128xf32>, vector<32x128xf32> -> vector<32x128xf32>
    %c0_10 = arith.constant 0 : index
    %c0_11 = arith.constant 0 : index
    %13 = vector.load %arg5[%c0_10, %c0_11] : memref<32x1xf32, #tpu.memory_space<vmem>>, vector<32x1xf32>
    %14 = vector.broadcast %13 : vector<32x1xf32> to vector<32x128xf32>
    %15 = arith.addf %12, %14 : vector<32x128xf32>
    %cst_12 = arith.constant 0.000000e+00 : f32
    %16 = vector.broadcast %cst_12 : f32 to vector<32x128xf32>
    %17 = arith.cmpf ogt, %15, %16 : vector<32x128xf32>
    %cst_13 = arith.constant 0.00999999977 : f32
    %18 = vector.broadcast %cst_13 : f32 to vector<32x128xf32>
    %19 = arith.mulf %18, %15 : vector<32x128xf32>
    %20 = arith.select %17, %15, %19 : vector<32x128xi1>, vector<32x128xf32>
    %c0_14 = arith.constant 0 : index
    %c0_15 = arith.constant 0 : index
    %21 = vector.load %arg6[%c0_14, %c0_15] : memref<32x1xf32, #tpu.memory_space<vmem>>, vector<32x1xf32>
    %22 = vector.broadcast %21 : vector<32x1xf32> to vector<32x128xf32>
    %23 = arith.mulf %20, %22 : vector<32x128xf32>
    %cst_16 = arith.constant dense<0.000000e+00> : vector<128xf32>
    %24 = vector.multi_reduction <add>, %23, %cst_16 [0] : vector<32x128xf32> to vector<128xf32>
    %25 = vector.shape_cast %24 : vector<128xf32> to vector<1x128xf32>
    %c0_17 = arith.constant 0 : index
    %c0_18 = arith.constant 0 : index
    %26 = memref.load %arg7[%c0_17, %c0_18] : memref<1x1xf32, #tpu.memory_space<smem>>
    %27 = vector.broadcast %26 : f32 to vector<1x128xf32>
    %28 = arith.addf %25, %27 : vector<1x128xf32>
    %cst_19 = arith.constant 0.000000e+00 : f32
    %29 = vector.broadcast %cst_19 : f32 to vector<1x128xf32>
    %30 = arith.cmpf ogt, %28, %29 : vector<1x128xf32>
    %cst_20 = arith.constant 0.00999999977 : f32
    %31 = vector.broadcast %cst_20 : f32 to vector<1x128xf32>
    %32 = arith.mulf %31, %28 : vector<1x128xf32>
    %33 = arith.select %30, %28, %32 : vector<1x128xi1>, vector<1x128xf32>
    %c0_21 = arith.constant 0 : index
    %c0_22 = arith.constant 0 : index
    %34 = vector.load %arg8[%c0_21, %c0_22] : memref<1x128xf32, #tpu.memory_space<vmem>>, vector<1x128xf32>
    tpu.vector_store %arg8[%c0_21, %c0_22], %33 {strides = array<i32>} : memref<1x128xf32, #tpu.memory_space<vmem>>, vector<1x128xf32>,
    return
  }
  func.func @transform_0(%arg0: i32) -> (i32, i32) {
    %c0_i32 = arith.constant 0 : i32
    %c0_i32_0 = arith.constant 0 : i32
    return %c0_i32, %arg0 : i32, i32
  }
  func.func @transform_1(%arg0: i32) -> (i32, i32) {
    %c0_i32 = arith.constant 0 : i32
    %c0_i32_0 = arith.constant 0 : i32
    %c0_i32_1 = arith.constant 0 : i32
    return %c0_i32, %c0_i32_0 : i32, i32
  }
  func.func @transform_2(%arg0: i32) -> (i32, i32) {
    %c0_i32 = arith.constant 0 : i32
    %c0_i32_0 = arith.constant 0 : i32
    %c0_i32_1 = arith.constant 0 : i32
    return %c0_i32, %c0_i32_0 : i32, i32
  }
  func.func @transform_3(%arg0: i32) -> (i32, i32) {
    %c0_i32 = arith.constant 0 : i32
    %c0_i32_0 = arith.constant 0 : i32
    %c0_i32_1 = arith.constant 0 : i32
    return %c0_i32, %c0_i32_0 : i32, i32
  }
  func.func @transform_4(%arg0: i32) -> (i32, i32) {
    %c0_i32 = arith.constant 0 : i32
    %c0_i32_0 = arith.constant 0 : i32
    %c0_i32_1 = arith.constant 0 : i32
    return %c0_i32, %c0_i32_0 : i32, i32
  }
  func.func @transform_5(%arg0: i32) -> (i32, i32) {
    %c0_i32 = arith.constant 0 : i32
    %c0_i32_0 = arith.constant 0 : i32
    %c0_i32_1 = arith.constant 0 : i32
    return %c0_i32, %c0_i32_0 : i32, i32
  }
  func.func @transform_6(%arg0: i32) -> (i32, i32) {
    %c0_i32 = arith.constant 0 : i32
    %c0_i32_0 = arith.constant 0 : i32
    %c0_i32_1 = arith.constant 0 : i32
    return %c0_i32, %c0_i32_0 : i32, i32
  }
  func.func @transform_7(%arg0: i32) -> (i32, i32) {
    %c0_i32 = arith.constant 0 : i32
    %c0_i32_0 = arith.constant 0 : i32
    return %c0_i32, %arg0 : i32, i32
  }
}

</mosaic_0001>

<bundles_post_ra>
// kernel: tpu_custom_call.1
= control target key start
LH: loop header
LB: loop body
LE: loop exit
PB: predicated region body
PF: predicated region fallthrough
CT: control target
= control target key end

     0   :  { %vm70_vm0 = vcmask 1042432   ;;  %vm57_vm1 = vcmask 23552   ;;  %v451_v5 = vmov 0   ;;  %s579_s0 = inlined_call_operand.vmem [shape: f32[3,128], index: 0, kind: input, shape index: {}]   ;;  %s580_s1 = inlined_call_operand.vmem [shape: f32[32,3], index: 1, kind: input, shape index: {}]   ;;  %s581_s2 = inlined_call_operand.vmem [shape: f32[32,1], index: 2, kind: input, shape index: {}]   ;;  %s582_s3 = inlined_call_operand.vmem [shape: f32[32,32], index: 3, kind: input, shape index: {}]   ;;  %s583_s4 = inlined_call_operand.vmem [shape: f32[32,1], index: 4, kind: input, shape index: {}]   ;;  %s584_s5 = inlined_call_operand.vmem [shape: f32[32,1], index: 5, kind: input, shape index: {}]   ;;  %s585_s6 = inlined_call_operand.<no memory space> [shape: f32[1,1], index: 6, kind: input, shape index: {}]   ;;  %s586_s7 = inlined_call_operand.hbm [shape: f32[1,128], index: 7, kind: output, shape index: {}]  }
   0x1   :  { %v28_v0 = vld [vmem:[%s579_s0] sm:$0x7]  ;;  %v30_v2 = vld [vmem:[%s580_s1 + $0x8] sm:$0xff]  ;;  %v31_v3 = vld [vmem:[%s580_s1 + $0x10] sm:$0xff]  ;;  %425 = vset.pattern.permute.xlu0 %v451_v5  ;;  %426 = vset.pattern.permute.xlu1 %v451_v5 }
   0x2   :  { %v29_v1 = vld [vmem:[%s580_s1] sm:$0xff]  ;;  %389 = vmatprep.subr.msk.mxu0 %vm70_vm0, %v28_v0  ;;  %v35_v6 = vld [vmem:[%s581_s2 + $0x10] sm:$0xff]  ;;  %v32_v7 = vld [vmem:[%s580_s1 + $0x18] sm:$0xff] }
   0x3   :  { %391 = vmatprep.mubr.msk.f32.mxu0 %vm57_vm1, %v29_v1  ;;  %v33_v4 = vld [vmem:[%s581_s2] sm:$0xff]  ;;  %390 = vmatpush3.msk.msra.mxu0 %vm70_vm0, %v28_v0  ;;  %v34_v8 = vld [vmem:[%s581_s2 + $0x8] sm:$0xff] }
   0x4   :  { %392 = vmatmul.mubr.msk.f32.vlgmr.msra.gmra.mrb[0].mxu0 %vm57_vm1, %v30_v2  ;;  %39 = vperm.xlu0 %425, %v33_v4  }
   0x5   :  { %394 = vmatprep.mubr.msk.f32.mxu0 %vm57_vm1, %v31_v3  ;;  %49 = vperm.xlu1 %426, %v35_v6  }
   0x6   :  { %13 = vsyncpa [#allocation4], 0  ;;  %v36_v9 = vld [vmem:[%s581_s2 + $0x18] sm:$0xff]  ;;  %v175_v10 = vld [vmem:[%s583_s4] sm:$0xff]  ;;  %vm199_vm2 = vcmask 261120   ;;  %s452_s15 = smov [#allocation3]  }
   0x7   :  { %v176_v11 = vld [vmem:[%s583_s4 + $0x8] sm:$0xff]  ;;  %v177_v12 = vld [vmem:[%s583_s4 + $0x10] sm:$0xff]  ;;  %v178_v13 = vld [vmem:[%s583_s4 + $0x18] sm:$0xff]  ;;  %s359_s16 = sshll.u32 %s452_s15, 4  ;;  %s360_s16 = int_to_ptr.vmem [resolvable:$true] %s359_s16 }
   0x8   :  { %395 = vmatmul.mubr.msk.f32.gmra.mrb[2].mxu0 %vm57_vm1, %v32_v7  ;;  %44 = vperm.xlu0 %425, %v34_v8   ;;  %v309_v14 = vld [vmem:[%s584_s5] sm:$0xff]  ;;  %v310_v15 = vld [vmem:[%s584_s5 + $0x8] sm:$0xff]  ;;  %v311_v16 = vld [vmem:[%s584_s5 + $0x10] sm:$0xff]  ;;  %s427_s17 = scalar_lea.vmem %s360_s16, 16  ;;  %s431_s18 = scalar_lea.vmem %s360_s16, 32 }
   0x9   :  { %54 = vperm.xlu1 %426, %v36_v9   ;;  %v312_v17 = vld [vmem:[%s584_s5 + $0x18] sm:$0xff]  ;;  %v171_v18 = vld [vmem:[%s582_s3] sm:$0xff]  ;;  %v173_v19 = vld [vmem:[%s582_s3 + $0x10] sm:$0xff]  ;;  %p428_p0 = scmp.ne.s32.totalorder %s360_s16, %s427_s17  ;;  %p432_p1 = scmp.lt.s32.totalorder %s360_s16, %s360_s16 }
   0xa   :  { %405 = vmatprep.mubr.msk.f32.mxu0 %vm199_vm2, %v171_v18  ;;  %408 = vmatprep.mubr.msk.f32.mxu1 %vm199_vm2, %v173_v19  ;;  %v172_v42 = vld [vmem:[%s582_s3 + $0x8] sm:$0xff]  ;;  %v174_v43 = vld [vmem:[%s582_s3 + $0x18] sm:$0xff]  ;;  %p433_p2 = scmp.lt.s32.totalorder %s431_s18, %s427_s17 }
   0xc   :  { %181 = vperm.xlu0 %425, %v175_v10   ;;  %p434_p3 = por %p433_p2, %p432_p1 }
   0xd   :  { %186 = vperm.xlu1 %426, %v176_v11  }
   0xe   :  { %p435_p4 = pnand %p434_p3, %p428_p0 }
  0x10   :  { %191 = vperm.xlu0 %425, %v177_v12  }
  0x11   :  { %196 = vperm.xlu1 %426, %v178_v13  }
  0x14   :  { %315 = vperm.xlu0 %425, %v309_v14  }
  0x15   :  { %320 = vperm.xlu1 %426, %v310_v15  }
  0x18   :  { %325 = vperm.xlu0 %425, %v311_v16   ;;  %v347_v16 = vstv %s585_s6 }
  0x19   :  { %330 = vperm.xlu1 %426, %v312_v17  }
  0x83   :  { %v40_v20 = vpop.permute.xlu0 %39 }
  0x84   :  { %v50_v21 = vpop.permute.xlu1 %49 }
  0x87   :  { %v45_v22 = vpop.permute.xlu0 %44 }
  0x88   :  { %v55_v28 = vpop.permute.xlu1 %54 }
  0x8b   :  { %v182_v44 = vpop.permute.xlu0 %181 }
  0x8c   :  { %v187_v45 = vpop.permute.xlu1 %186 }
  0x8f   :  { %v192_v46 = vpop.permute.xlu0 %191 }
  0x90   :  { %v197_v47 = vpop.permute.xlu1 %196 }
  0x93   :  { %v316_v54 = vpop.permute.xlu0 %315 }
  0x94   :  { %v321_v59 = vpop.permute.xlu1 %320 }
  0x97   :  { %v326_v3 = vpop.permute.xlu0 %325 }
  0x98   :  { %v331_v7 = vpop.permute.xlu1 %330 }
  0xd7   :  { %v393_v23 = vpop.f32.mrb[0].mxu0 }
  0xd8   :  { %v146_v24 = vadd.f32 %v393_v23, %v45_v22  ;;  %v140_v25 = vpop.f32.mrb[1].mxu0 }
  0xd9   :  { %v141_v26 = vadd.f32 %v140_v25, %v40_v20 }
  0xda   :  { %vm160_vm3 = vcmp.gt.f32.partialorder %v146_v24, 0.0  ;;  %v164_v27 = vmul.f32 0.01, %v146_v24 }
  0xdb   :  { %vm159_vm4 = vcmp.gt.f32.partialorder %v141_v26, 0.0  ;;  %v163_v29 = vmul.f32 0.01, %v141_v26  ;;  %v396_v30 = vpop.f32.mrb[2].mxu0 }
  0xdc   :  { %v168_v31 = vsel %vm160_vm3, %v146_v24, %v164_v27  ;;  %v156_v32 = vadd.f32 %v396_v30, %v55_v28  ;;  %v150_v33 = vpop.f32.mrb[3].mxu0 }
  0xdd   :  { %v167_v34 = vsel %vm159_vm4, %v141_v26, %v163_v29  ;;  %v151_v35 = vadd.f32 %v150_v33, %v50_v21 }
  0xde   :  { %v411_v36 = vpack.c.bf16 %v168_v31, %v167_v34  ;;  %vm162_vm5 = vcmp.gt.f32.partialorder %v156_v32, 0.0  ;;  %v166_v37 = vmul.f32 0.01, %v156_v32 }
  0xdf   :  { %vm161_vm6 = vcmp.gt.f32.partialorder %v151_v35, 0.0  ;;  %v165_v38 = vmul.f32 0.01, %v151_v35 }
  0xe0   :  { %v170_v39 = vsel %vm162_vm5, %v156_v32, %v166_v37  ;;  %412 = vmatprep.subr.bf16.mxu0 %v411_v36  ;;  %419 = vmatprep.subr.bf16.mxu1 %v411_v36 }
  0xe1   :  { %v169_v40 = vsel %vm161_vm6, %v151_v35, %v165_v38  ;;  %414 = vmatpush3.bf16.msra.mxu0 %v411_v36  ;;  %421 = vmatpush3.bf16.msra.mxu1 %v411_v36 }
  0xe2   :  { %v415_v41 = vpack.c.bf16 %v170_v39, %v169_v40 }
  0xe4   :  { %416 = vmatprep.subr.bf16.mxu0 %v415_v41  ;;  %420 = vmatprep.subr.bf16.mxu1 %v415_v41 }
  0xe5   :  { %418 = vmatpush3.bf16.msra.mxu0 %v415_v41  ;;  %422 = vmatpush3.bf16.msra.mxu1 %v415_v41 }
  0xe8   :  { %406 = vmatmul.mubr.msk.f32.vlgmr.msra.gmra.mrb[4].mxu0 %vm199_vm2, %v172_v42  ;;  %409 = vmatmul.mubr.msk.f32.vlgmr.msra.gmra.mrb[0].mxu1 %vm199_vm2, %v174_v43 }
 0x1bb   :  { %v407_v48 = vpop.f32.mrb[4].mxu0  ;;  %v410_v49 = vpop.f32.mrb[0].mxu1 }
 0x1bc   :  { %v284_v50 = vadd.f32 %v407_v48, %v187_v45  ;;  %v294_v51 = vadd.f32 %v410_v49, %v197_v47  ;;  %v278_v52 = vpop.f32.mrb[5].mxu0  ;;  %v288_v53 = vpop.f32.mrb[1].mxu1 }
 0x1bd   :  { %v279_v55 = vadd.f32 %v278_v52, %v182_v44  ;;  %v289_v56 = vadd.f32 %v288_v53, %v192_v46 }
 0x1be   :  { %vm298_vm7 = vcmp.gt.f32.partialorder %v284_v50, 0.0  ;;  %v302_v57 = vmul.f32 0.01, %v284_v50  ;;  %v304_v58 = vmul.f32 0.01, %v294_v51  ;;  %vm300_vm10 = vcmp.gt.f32.partialorder %v294_v51, 0.0 }
 0x1bf   :  { %vm297_vm8 = vcmp.gt.f32.partialorder %v279_v55, 0.0  ;;  %v301_v60 = vmul.f32 0.01, %v279_v55  ;;  %vm299_vm9 = vcmp.gt.f32.partialorder %v289_v56, 0.0  ;;  %v303_v61 = vmul.f32 0.01, %v289_v56 }
 0x1c0   :  { %v306_v62 = vsel %vm298_vm7, %v284_v50, %v302_v57  ;;  %v308_v4 = vsel %vm300_vm10, %v294_v51, %v304_v58 }
 0x1c1   :  { %v334_v63 = vmul.f32 %v321_v59, %v306_v62  ;;  %v305_v0 = vsel %vm297_vm8, %v279_v55, %v301_v60  ;;  %v307_v1 = vsel %vm299_vm9, %v289_v56, %v303_v61  ;;  %v336_v8 = vmul.f32 %v331_v7, %v308_v4 }
 0x1c2   :  { %v333_v2 = vmul.f32 %v316_v54, %v305_v0  ;;  %v335_v6 = vmul.f32 %v326_v3, %v307_v1 }
 0x1c4   :  { %v337_v5 = vadd.f32 %v334_v63, %v333_v2 }
 0x1c6   :  { %v338_v9 = vadd.f32 %v337_v5, %v335_v6 }
 0x1c8   :  { %v339_v10 = vadd.f32 %v338_v9, %v336_v8 }
 0x1ca   :  { %v340_v11 = vrot.slane %v339_v10, 4 }
 0x1cc   :  { %v341_v12 = vadd.f32 %v340_v11, %v339_v10 }
 0x1ce   :  { %v342_v13 = vrot.slane %v341_v12, 2 }
 0x1d0   :  { %v343_v14 = vadd.f32 %v342_v13, %v341_v12 }
 0x1d2   :  { %v344_v15 = vrot.slane %v343_v14, 1 }
 0x1d4   :  { %v345_v17 = vadd.f32 %v344_v15, %v343_v14 }
 0x1d6   :  { %v348_v18 = vadd.f32 %v347_v16, %v345_v17 }
 0x1d8   :  { %vm349_vm11 = vcmp.gt.f32.partialorder %v348_v18, 0.0  ;;  %v350_v19 = vmul.f32 0.01, %v348_v18 }
 0x1da   :  { %v351_v20 = vsel %vm349_vm11, %v348_v18, %v350_v19 }
 0x1db   :  { %352 = vst [vmem:[#allocation3] sm:$0x1] %v351_v20 }
 0x1dc   :  { %438 = shalt.err (!%p435_p4)
}
 0x1dd   :  { %s439_s6 = scalar_lea.hbm %s586_s7, 16 }
 0x1de   :  { %p440_p5 = scmp.ne.s32.totalorder %s586_s7, %s439_s6  ;;  %p443_p6 = scmp.lt.u32.totalorder %s439_s6, %s586_s7 }
 0x1e0   :  { %p445_p7 = pnand %p443_p6, %p440_p5 }
 0x1e2   :  { %448 = shalt.err (!%p445_p7)
}
 0x1e3   :  { %362 = dma.vmem_to_hbm [thread:$0]  %s360_s16, 16, %s586_s7, [#allocation4]  }
 0x1e4   :  { %449 = dma.done.wait [#allocation4], 16  }
 0x1e5   :  { %450 = vsyncadd [#allocation4], 4294967280 }
 0x1e6   :  { %366 = vsyncpa [#allocation4], 1 }

</bundles_post_ra>
